<compile_context>
chip_gen: v7x
topology: tpu7x:2x2x1
jax: 0.10.0
libtpu: 0.0.40
codegen_flags: <defaults>
</compile_context>

<pallas_src>
import jax
import jax.numpy as jnp
from jax.experimental import pallas as pl
from jax.experimental.pallas import tpu as pltpu

SLICE_INDEX = 0  # TODO(synk): torch __init__ never sets self.slice; "Start" => index 0.


def _vmem_limit_bytes():
    # ~64 MiB is comfortable on v5e/v6e (128 MiB physical VMEM); v7x only has
    # 64 MiB physical so stay well below that. Query the chip when possible.
    try:
        cap = pltpu.get_tpu_info().vmem_capacity_bytes
        return int(min(64 << 20, (cap * 3) // 4))
    except Exception:
        return 48 << 20  # safe on every generation


def mean_start_max_pooler(x, padding_mask):
    """x: (S, B, H) float; padding_mask: (S, B) bool (True = padding). Returns (B, 3H)."""
    S, B, H = x.shape
    assert padding_mask.shape == (S, B)
    itemsize = jnp.dtype(x.dtype).itemsize

    # ---- tiling plan -------------------------------------------------------
    # Batch split only when it keeps blocks (8,128)-legal (bb % 8 == 0); gives
    # v7x a second parallel unit at production batch sizes.
    n_b = 2 if (B >= 16 and B % 16 == 0) else 1
    bb = B // n_b

    budget = 8 << 20  # per x buffer; Pallas double-buffers it
    ts = int(min(S, max(1, budget // (bb * H * itemsize))))
    n_s = -(-S // ts)
    s_pad = n_s * ts

    # ---- tiny wrapper-side precompute (O(S*B), negligible vs x traffic) -----
    validf = jnp.logical_not(padding_mask).astype(jnp.float32)        # (S, B), 1 = keep
    inv_cnt = (1.0 / jnp.sum(validf, axis=0))[:, None]                # (B, 1), exact divide
    if s_pad > S:
        # Zero rows beyond S make the ragged final x tile safe: OOB garbage is
        # select-masked out and never touched arithmetically.
        validf = jnp.pad(validf, ((0, s_pad - S), (0, 0)))
    validf = validf[:, :, None]                                       # (s_pad, B, 1)

    def kernel(x_ref, valid_ref, inv_ref, out_ref, acc_sum, acc_max):
        s = pl.program_id(1)
        last = pl.num_programs(1) - 1

        @pl.when(s == 0)
        def _init():
            acc_sum[...] = jnp.zeros_like(acc_sum)
            acc_max[...] = jnp.full_like(acc_max, -jnp.inf)
            # "start" token: input[0] (in the first S tile), taken
            # unconditionally, matching torch's input[self.slice].
            out_ref[:, H:2 * H] = x_ref[SLICE_INDEX].astype(out_ref.dtype)

        xs = x_ref[...]                       # (ts, bb, H) input dtype
        valid = valid_ref[...] > 0.0          # (ts, bb, 1) bool (cheap: H× smaller)

        # masked sum in f32 (select, not multiply -> pad/OOB garbage can't poison it)
        acc_sum[...] += jnp.sum(jnp.where(valid, xs.astype(jnp.float32), 0.0), axis=0)
        # masked max in the input dtype (exact; lane-packed for bf16)
        acc_max[...] = jnp.maximum(acc_max[...],
                                   jnp.max(jnp.where(valid, xs, -jnp.inf), axis=0))

        @pl.when(s == last)
        def _finish():
            out_ref[:, :H] = (acc_sum[...] * inv_ref[...]).astype(out_ref.dtype)
            out_ref[:, 2 * H:] = acc_max[...].astype(out_ref.dtype)

    out = pl.pallas_call(
        kernel,
        out_shape=jax.ShapeDtypeStruct((B, 3 * H), x.dtype),
        grid_spec=pltpu.PrefetchScalarGridSpec(
            num_scalar_prefetch=0,
            grid=(n_b, n_s),                                       # (parallel, reduction last)
            in_specs=[
                pl.BlockSpec((ts, bb, H), lambda b, s: (s, b, 0)),  # x slab (contiguous)
                pl.BlockSpec((ts, bb, 1), lambda b, s: (s, b, 0)),  # valid mask
                pl.BlockSpec((bb, 1), lambda b, s: (b, 0)),         # 1 / token count
            ],
            out_specs=pl.BlockSpec((bb, 3 * H), lambda b, s: (b, 0)),
            scratch_shapes=[
                pltpu.VMEM((bb, H), jnp.float32),   # running masked sum (f32)
                pltpu.VMEM((bb, H), x.dtype),       # running masked max (input dtype)
            ],
        ),
        compiler_params=pltpu.CompilerParams(
            dimension_semantics=("parallel", "arbitrary"),
            vmem_limit_bytes=_vmem_limit_bytes(),
        ),
    )(x, validf, inv_cnt)
    return out


def reference(x, padding_mask):
    valid = jnp.logical_not(padding_mask)[..., None]
    xf = x.astype(jnp.float32)
    vf = valid.astype(jnp.float32)
    mean = jnp.sum(xf * vf, axis=0) / jnp.sum(vf, axis=0)
    start = xf[SLICE_INDEX]
    mx = jnp.max(jnp.where(valid, xf, -jnp.inf), axis=0)
    return jnp.concatenate([mean, start, mx], axis=-1).astype(x.dtype)


if __name__ == "__main__":
    S, B, H = 8, 2, 32
    key = jax.random.PRNGKey(0)
    x = jax.random.normal(key, (S, B, H), dtype=jnp.float32)

    # padding_mask: True = padding. Batch 0 has 8 valid tokens, batch 1 has 5.
    seq_ids = jnp.arange(S)[:, None]                      # (S, 1)
    lengths = jnp.array([8, 5])[None, :]                  # (1, B)
    padding_mask = seq_ids >= lengths                     # (S, B) bool

    out = jax.block_until_ready(mean_start_max_pooler(x, padding_mask))
    ref = reference(x, padding_mask)
    assert out.shape == (B, 3 * H), out.shape
    assert jnp.allclose(out, ref, atol=1e-5, rtol=1e-5), "mismatch vs reference"
    print("KERNEL_OK")
</pallas_src>

<mosaic_0001>
module attributes {stable_mosaic.version = 11 : i64} {
  func.func @kernel(%arg0: i32, %arg1: i32, %arg2: memref<8x2x32xf32, #tpu.memory_space<vmem>>, %arg3: memref<8x2x1xf32, #tpu.memory_space<vmem>>, %arg4: memref<2x1xf32, #tpu.memory_space<vmem>>, %arg5: memref<2x96xf32, #tpu.memory_space<vmem>>, %arg6: memref<2x32xf32, #tpu.memory_space<vmem>>, %arg7: memref<2x32xf32, #tpu.memory_space<vmem>>) attributes {dimension_semantics = [#tpu.dimension_semantics<parallel>, #tpu.dimension_semantics<arbitrary>], iteration_bounds = array<i64: 1, 1>, scalar_prefetch = 0 : i64, scratch_operands = 2 : i64, tpu.core_type = #tpu.core_type<tc>, window_params = [{transform_indices = @transform_0, window_bounds = array<i64: 8, 2, 32>}, {transform_indices = @transform_1, window_bounds = array<i64: 8, 2, 1>}, {transform_indices = @transform_2, window_bounds = array<i64: 2, 1>}, {transform_indices = @transform_3, window_bounds = array<i64: 2, 96>}]} {
    %c0_i32 = arith.constant 0 : i32
    %0 = arith.cmpi eq, %arg1, %c0_i32 : i32
    %1 = arith.extui %0 : i1 to i32
    %c0_i32_0 = arith.constant 0 : i32
    %2 = arith.cmpi ne, %1, %c0_i32_0 : i32
    scf.if %2 {
      %cst_20 = arith.constant 0.000000e+00 : f32
      %26 = vector.broadcast %cst_20 : f32 to vector<2x32xf32>
      %c0_21 = arith.constant 0 : index
      %c0_22 = arith.constant 0 : index
      %27 = vector.load %arg6[%c0_21, %c0_22] : memref<2x32xf32, #tpu.memory_space<vmem>>, vector<2x32xf32>
      tpu.vector_store %arg6[%c0_21, %c0_22], %26 {strides = array<i32>} : memref<2x32xf32, #tpu.memory_space<vmem>>, vector<2x32xf32>,
      %cst_23 = arith.constant 0xFF800000 : f32
      %28 = vector.broadcast %cst_23 : f32 to vector<2x32xf32>
      %c0_24 = arith.constant 0 : index
      %c0_25 = arith.constant 0 : index
      %29 = vector.load %arg7[%c0_24, %c0_25] : memref<2x32xf32, #tpu.memory_space<vmem>>, vector<2x32xf32>
      tpu.vector_store %arg7[%c0_24, %c0_25], %28 {strides = array<i32>} : memref<2x32xf32, #tpu.memory_space<vmem>>, vector<2x32xf32>,
      %c0_26 = arith.constant 0 : index
      %c0_27 = arith.constant 0 : index
      %c0_28 = arith.constant 0 : index
      %30 = vector.load %arg2[%c0_26, %c0_27, %c0_28] : memref<8x2x32xf32, #tpu.memory_space<vmem>>, vector<1x2x32xf32>
      %31 = vector.shape_cast %30 : vector<1x2x32xf32> to vector<2x32xf32>
      %c0_29 = arith.constant 0 : index
      %c32 = arith.constant 32 : index
      %32 = vector.load %arg5[%c0_29, %c32] : memref<2x96xf32, #tpu.memory_space<vmem>>, vector<2x32xf32>
      tpu.vector_store %arg5[%c0_29, %c32], %31 {strides = array<i32>} : memref<2x96xf32, #tpu.memory_space<vmem>>, vector<2x32xf32>,
    } else {
    }
    %c0 = arith.constant 0 : index
    %c0_1 = arith.constant 0 : index
    %c0_2 = arith.constant 0 : index
    %3 = vector.load %arg2[%c0, %c0_1, %c0_2] : memref<8x2x32xf32, #tpu.memory_space<vmem>>, vector<8x2x32xf32>
    %c0_3 = arith.constant 0 : index
    %c0_4 = arith.constant 0 : index
    %c0_5 = arith.constant 0 : index
    %4 = vector.load %arg3[%c0_3, %c0_4, %c0_5] : memref<8x2x1xf32, #tpu.memory_space<vmem>>, vector<8x2x1xf32>
    %cst = arith.constant 0.000000e+00 : f32
    %5 = vector.broadcast %cst : f32 to vector<8x2x1xf32>
    %6 = arith.cmpf ogt, %4, %5 : vector<8x2x1xf32>
    %c0_6 = arith.constant 0 : index
    %c0_7 = arith.constant 0 : index
    %7 = vector.load %arg6[%c0_6, %c0_7] : memref<2x32xf32, #tpu.memory_space<vmem>>, vector<2x32xf32>
    %cst_8 = arith.constant 0.000000e+00 : f32
    %8 = vector.shape_cast %6 : vector<8x2x1xi1> to vector<8x2x1xi1>
    %9 = vector.broadcast %8 : vector<8x2x1xi1> to vector<8x2x32xi1>
    %10 = vector.broadcast %cst_8 : f32 to vector<8x2x32xf32>
    %11 = arith.select %9, %3, %10 : vector<8x2x32xi1>, vector<8x2x32xf32>
    %cst_9 = arith.constant dense<0.000000e+00> : vector<2x32xf32>
    %12 = vector.multi_reduction <add>, %11, %cst_9 [0] : vector<8x2x32xf32> to vector<2x32xf32>
    %13 = arith.addf %7, %12 : vector<2x32xf32>
    %c0_10 = arith.constant 0 : index
    %c0_11 = arith.constant 0 : index
    %14 = vector.load %arg6[%c0_10, %c0_11] : memref<2x32xf32, #tpu.memory_space<vmem>>, vector<2x32xf32>
    tpu.vector_store %arg6[%c0_10, %c0_11], %13 {strides = array<i32>} : memref<2x32xf32, #tpu.memory_space<vmem>>, vector<2x32xf32>,
    %c0_12 = arith.constant 0 : index
    %c0_13 = arith.constant 0 : index
    %15 = vector.load %arg7[%c0_12, %c0_13] : memref<2x32xf32, #tpu.memory_space<vmem>>, vector<2x32xf32>
    %cst_14 = arith.constant 0xFF800000 : f32
    %16 = vector.shape_cast %6 : vector<8x2x1xi1> to vector<8x2x1xi1>
    %17 = vector.broadcast %16 : vector<8x2x1xi1> to vector<8x2x32xi1>
    %18 = vector.broadcast %cst_14 : f32 to vector<8x2x32xf32>
    %19 = arith.select %17, %3, %18 : vector<8x2x32xi1>, vector<8x2x32xf32>
    %cst_15 = arith.constant dense<0xFF800000> : vector<2x32xf32>
    %20 = vector.multi_reduction <maximumf>, %19, %cst_15 [0] : vector<8x2x32xf32> to vector<2x32xf32>
    %21 = arith.maximumf %15, %20 : vector<2x32xf32>
    %c0_16 = arith.constant 0 : index
    %c0_17 = arith.constant 0 : index
    %22 = vector.load %arg7[%c0_16, %c0_17] : memref<2x32xf32, #tpu.memory_space<vmem>>, vector<2x32xf32>
    tpu.vector_store %arg7[%c0_16, %c0_17], %21 {strides = array<i32>} : memref<2x32xf32, #tpu.memory_space<vmem>>, vector<2x32xf32>,
    %c0_i32_18 = arith.constant 0 : i32
    %23 = arith.cmpi eq, %arg1, %c0_i32_18 : i32
    %24 = arith.extui %23 : i1 to i32
    %c0_i32_19 = arith.constant 0 : i32
    %25 = arith.cmpi ne, %24, %c0_i32_19 : i32
    scf.if %25 {
      %c0_20 = arith.constant 0 : index
      %c0_21 = arith.constant 0 : index
      %26 = vector.load %arg6[%c0_20, %c0_21] : memref<2x32xf32, #tpu.memory_space<vmem>>, vector<2x32xf32>
      %c0_22 = arith.constant 0 : index
      %c0_23 = arith.constant 0 : index
      %27 = vector.load %arg4[%c0_22, %c0_23] : memref<2x1xf32, #tpu.memory_space<vmem>>, vector<2x1xf32>
      %28 = vector.broadcast %27 : vector<2x1xf32> to vector<2x32xf32>
      %29 = arith.mulf %26, %28 : vector<2x32xf32>
      %c0_24 = arith.constant 0 : index
      %c0_25 = arith.constant 0 : index
      %30 = vector.load %arg5[%c0_24, %c0_25] : memref<2x96xf32, #tpu.memory_space<vmem>>, vector<2x32xf32>
      tpu.vector_store %arg5[%c0_24, %c0_25], %29 {strides = array<i32>} : memref<2x96xf32, #tpu.memory_space<vmem>>, vector<2x32xf32>,
      %c0_26 = arith.constant 0 : index
      %c0_27 = arith.constant 0 : index
      %31 = vector.load %arg7[%c0_26, %c0_27] : memref<2x32xf32, #tpu.memory_space<vmem>>, vector<2x32xf32>
      %c0_28 = arith.constant 0 : index
      %c64 = arith.constant 64 : index
      %32 = vector.load %arg5[%c0_28, %c64] : memref<2x96xf32, #tpu.memory_space<vmem>>, vector<2x32xf32>
      tpu.vector_store %arg5[%c0_28, %c64], %31 {strides = array<i32>} : memref<2x96xf32, #tpu.memory_space<vmem>>, vector<2x32xf32>,
    } else {
    }
    return
  }
  func.func @transform_0(%arg0: i32, %arg1: i32) -> (i32, i32, i32) {
    %c0_i32 = arith.constant 0 : i32
    %c0_i32_0 = arith.constant 0 : i32
    return %arg1, %arg0, %c0_i32 : i32, i32, i32
  }
  func.func @transform_1(%arg0: i32, %arg1: i32) -> (i32, i32, i32) {
    %c0_i32 = arith.constant 0 : i32
    %c0_i32_0 = arith.constant 0 : i32
    return %arg1, %arg0, %c0_i32 : i32, i32, i32
  }
  func.func @transform_2(%arg0: i32, %arg1: i32) -> (i32, i32) {
    %c0_i32 = arith.constant 0 : i32
    %c0_i32_0 = arith.constant 0 : i32
    return %arg0, %c0_i32 : i32, i32
  }
  func.func @transform_3(%arg0: i32, %arg1: i32) -> (i32, i32) {
    %c0_i32 = arith.constant 0 : i32
    %c0_i32_0 = arith.constant 0 : i32
    return %arg0, %c0_i32 : i32, i32
  }
}

</mosaic_0001>

<bundles_post_ra>
// kernel: tpu_custom_call.1
= control target key start
LH: loop header
LB: loop body
LE: loop exit
PB: predicated region body
PF: predicated region fallthrough
CT: control target
= control target key end

     0   :  { %v211_v2 = vmov 0   ;;  %s333_s0 = inlined_call_operand.vmem [shape: f32[8,2,32], index: 0, kind: input, shape index: {}]   ;;  %s334_s1 = inlined_call_operand.vmem [shape: f32[8,2,1], index: 1, kind: input, shape index: {}]   ;;  %s335_s2 = inlined_call_operand.vmem [shape: f32[2,1], index: 2, kind: input, shape index: {}]   ;;  %s336_s3 = inlined_call_operand.hbm [shape: f32[2,96], index: 3, kind: output, shape index: {}]  }
   0x1   :  { %v39_v0 = vld [vmem:[%s334_s1 + $0x4] sm:$0x3]  ;;  %v37_v1 = vld [vmem:[%s334_s1] sm:$0x3]  ;;  %186 = vset.pattern.permute.xlu1 %v211_v2  ;;  %185 = vset.pattern.permute.xlu0 %v211_v2  ;;  %v40_v3 = vld [vmem:[%s334_s1 + $0x6] sm:$0x3] }
   0x2   :  { %vm47_vm0 = vcmp.gt.f32.partialorder %v39_v0, 0.0  ;;  %vm45_vm1 = vcmp.gt.f32.partialorder %v37_v1, 0.0  ;;  %v38_v4 = vld [vmem:[%s334_s1 + $0x2] sm:$0x3]  ;;  %vm48_vm2 = vcmp.gt.f32.partialorder %v40_v3, 0.0 }
   0x3   :  { %v56_v5 = vsel %vm47_vm0, 1, %v211_v2  ;;  %v54_v6 = vsel %vm45_vm1, 1, %v211_v2  ;;  %vm46_vm3 = vcmp.gt.f32.partialorder %v38_v4, 0.0  ;;  %v42_v7 = vld [vmem:[%s334_s1 + $0xa] sm:$0x3]  ;;  %v57_v9 = vsel %vm48_vm2, 1, %v211_v2 }
   0x4   :  { %69 = vperm.xlu1 %186, %v56_v5   ;;  %63 = vperm.xlu0 %185, %v54_v6   ;;  %v41_v8 = vld [vmem:[%s334_s1 + $0x8] sm:$0x3]  ;;  %v55_v10 = vsel %vm46_vm3, 1, %v211_v2  ;;  %vm50_vm4 = vcmp.gt.f32.partialorder %v42_v7, 0.0  ;;  %v44_v11 = vld [vmem:[%s334_s1 + $0xe] sm:$0x3] }
   0x5   :  { %vm49_vm5 = vcmp.gt.f32.partialorder %v41_v8, 0.0  ;;  %v43_v12 = vld [vmem:[%s334_s1 + $0xc] sm:$0x3]  ;;  %v59_v13 = vsel %vm50_vm4, 1, %v211_v2 }
   0x6   :  { %v58_v14 = vsel %vm49_vm5, 1, %v211_v2 }
   0x8   :  { %72 = vperm.xlu1 %186, %v57_v9   ;;  %66 = vperm.xlu0 %185, %v55_v10  }
   0x9   :  { %8 = vsyncpa [#allocation5], 0  ;;  %vm52_vm6 = vcmp.gt.f32.partialorder %v44_v11, 0.0  ;;  %vm51_vm7 = vcmp.gt.f32.partialorder %v43_v12, 0.0  ;;  %vm19_vm8 = vcmask 254976   ;;  %v212_v19 = vmov 0.0  }
   0xa   :  { %v61_v15 = vsel %vm52_vm6, 1, %v211_v2  ;;  %v60_v16 = vsel %vm51_vm7, 1, %v211_v2  ;;  %v150_v17 = vld [vmem:[%s335_s2] sm:$0x3]  ;;  %20 = vst.msk [vmem:[#allocation2] sm:$0x3] %vm19_vm8, %v212_v19 }
   0xb   :  { %v22_v18 = vld [vmem:[%s333_s0] sm:$0x3]  ;;  %v213_v20 = vmov -inf   ;;  %s214_s4 = smov 32   ;;  %v31_v24 = vld [vmem:[%s333_s0 + $0x4] sm:$0x3] }
   0xc   :  { %78 = vperm.xlu1 %186, %v59_v13   ;;  %75 = vperm.xlu0 %185, %v58_v14   ;;  %21 = vst.msk [vmem:[#allocation3] sm:$0x3] %vm19_vm8, %v213_v20  ;;  %v29_v23 = vld [vmem:[%s333_s0] sm:$0x3]  ;;  %v30_v25 = vld [vmem:[%s333_s0 + $0x2] sm:$0x3] }
   0xd   :  { %v32_v29 = vld [vmem:[%s333_s0 + $0x6] sm:$0x3]  ;;  %v34_v34 = vld [vmem:[%s333_s0 + $0xa] sm:$0x3]  ;;  %v33_v35 = vld [vmem:[%s333_s0 + $0x8] sm:$0x3] }
   0xe   :  { %vm27_vm13 = vcmask 517376   ;;  %v36_v47 = vld [vmem:[%s333_s0 + $0xe] sm:$0x3]  ;;  %v35_v52 = vld [vmem:[%s333_s0 + $0xc] sm:$0x3]  ;;  %s215_s0 = smov 64  }
   0xf   :  { %s216_s20 = smov [#allocation4]   ;;  %vm163_vm2 = vcmask 779776  }
  0x10   :  { %84 = vperm.xlu1 %186, %v61_v15   ;;  %81 = vperm.xlu0 %185, %v60_v16   ;;  %s171_s21 = sshll.u32 %s216_s20, 4  ;;  %s172_s21 = int_to_ptr.vmem [resolvable:$true] %s171_s21 }
  0x11   :  { %v53_v16 = vld [vmem:[#allocation2] sm:$0x3]  ;;  %s187_s22 = scalar_lea.vmem %s172_s21, 32  ;;  %p192_p1 = scmp.lt.s32.totalorder %s172_s21, %s172_s21 }
  0x12   :  { %p188_p0 = scmp.ne.s32.totalorder %s172_s21, %s187_s22  ;;  %p193_p2 = scmp.lt.s32.totalorder %s187_s22, %s187_s22 }
  0x13   :  { %v120_v20 = vld [vmem:[#allocation3] sm:$0x3] }
  0x14   :  { %153 = vperm.xlu0 %185, %v150_v17   ;;  %24 = vrot.lane.b32.xlu1 %v22_v18, %s214_s4  ;;  %p194_p3 = por %p193_p2, %p192_p1 }
  0x16   :  { %p195_p4 = pnand %p194_p3, %p188_p0 }
  0x83   :  { %v70_v21 = vpop.permute.xlu1 %69  ;;  %v64_v22 = vpop.permute.xlu0 %63 }
  0x84   :  { %vm86_vm9 = vcmp.eq.s32.totalorder %v64_v22, 1  ;;  %vm88_vm10 = vcmp.eq.s32.totalorder %v70_v21, 1 }
  0x85   :  { %v94_v26 = vsel %vm86_vm9, %v29_v23, 0.0  ;;  %v96_v30 = vsel %vm88_vm10, %v31_v24, 0.0  ;;  %v121_v36 = vsel %vm86_vm9, %v29_v23, -inf  ;;  %v123_v42 = vsel %vm88_vm10, %v31_v24, -inf }
  0x86   :  { %v103_v32 = vsel %vm19_vm8, %v94_v26, 0.0  ;;  %v106_v41 = vsel %vm19_vm8, %v96_v30, 0.0  ;;  %v129_v48 = vsel %vm19_vm8, %v121_v36, -inf  ;;  %v131_v10 = vsel %vm19_vm8, %v123_v42, -inf }
  0x87   :  { %v73_v27 = vpop.permute.xlu1 %72  ;;  %v67_v28 = vpop.permute.xlu0 %66 }
  0x88   :  { %vm89_vm11 = vcmp.eq.s32.totalorder %v73_v27, 1  ;;  %vm87_vm12 = vcmp.eq.s32.totalorder %v67_v28, 1 }
  0x89   :  { %v95_v31 = vsel %vm87_vm12, %v30_v25, 0.0  ;;  %v97_v37 = vsel %vm89_vm11, %v32_v29, 0.0  ;;  %v124_v43 = vsel %vm89_vm11, %v32_v29, -inf  ;;  %v122_v50 = vsel %vm87_vm12, %v30_v25, -inf }
  0x8a   :  { %v104_v33 = vsel %vm19_vm8, %v95_v31, 0.0  ;;  %v108_v49 = vsel %vm19_vm8, %v97_v37, 0.0  ;;  %v132_v59 = vsel %vm19_vm8, %v124_v43, -inf  ;;  %v130_v61 = vsel %vm19_vm8, %v122_v50, -inf }
  0x8b   :  { %v105_v38 = vadd.f32 %v104_v33, %v103_v32  ;;  %v79_v39 = vpop.permute.xlu1 %78  ;;  %v76_v40 = vpop.permute.xlu0 %75 }
  0x8c   :  { %vm91_vm14 = vcmp.eq.s32.totalorder %v79_v39, 1  ;;  %vm90_vm15 = vcmp.eq.s32.totalorder %v76_v40, 1 }
  0x8d   :  { %v107_v44 = vadd.f32 %v106_v41, %v105_v38  ;;  %v126_v45 = vsel %vm91_vm14, %v34_v34, -inf  ;;  %v98_v46 = vsel %vm90_vm15, %v33_v35, 0.0  ;;  %v125_v51 = vsel %vm90_vm15, %v33_v35, -inf }
  0x8e   :  { %v99_v53 = vsel %vm91_vm14, %v34_v34, 0.0  ;;  %v135_v54 = vsel %vm19_vm8, %v126_v45, -inf  ;;  %v133_v56 = vsel %vm19_vm8, %v125_v51, -inf  ;;  %v110_v60 = vsel %vm19_vm8, %v98_v46, 0.0 }
  0x8f   :  { %v109_v55 = vadd.f32 %v108_v49, %v107_v44  ;;  %v85_v57 = vpop.permute.xlu1 %84  ;;  %v82_v58 = vpop.permute.xlu0 %81  ;;  %v112_v1 = vsel %vm19_vm8, %v99_v53, 0.0  ;;  %v136_v2 = vmax.f32 %v130_v61, %v135_v54  ;;  %v134_v3 = vmax.f32 %v129_v48, %v133_v56 }
  0x90   :  { %vm93_vm0 = vcmp.eq.s32.totalorder %v85_v57, 1  ;;  %vm92_vm1 = vcmp.eq.s32.totalorder %v82_v58, 1 }
  0x91   :  { %v111_v62 = vadd.f32 %v110_v60, %v109_v55  ;;  %v128_v63 = vsel %vm93_vm0, %v36_v47, -inf  ;;  %v100_v0 = vsel %vm92_vm1, %v35_v52, 0.0  ;;  %v101_v5 = vsel %vm93_vm0, %v36_v47, 0.0 }
  0x92   :  { %v139_v4 = vsel %vm19_vm8, %v128_v63, -inf  ;;  %v127_v8 = vsel %vm92_vm1, %v35_v52, -inf  ;;  %v114_v11 = vsel %vm19_vm8, %v100_v0, 0.0  ;;  %v116_v15 = vsel %vm19_vm8, %v101_v5, 0.0 }
  0x93   :  { %v140_v6 = vmax.f32 %v132_v59, %v139_v4  ;;  %v113_v7 = vadd.f32 %v112_v1, %v111_v62  ;;  %v25_v9 = vpop.permute.xlu1 %24  ;;  %v137_v12 = vsel %vm19_vm8, %v127_v8, -inf  ;;  %v141_v17 = vmax.f32 %v134_v3, %v136_v2  ;;  %v154_v24 = vpop.permute.xlu0 %153 }
  0x94   :  { %28 = vst.msk [vmem:[#allocation4] sm:$0x3] %vm27_vm13, %v25_v9  ;;  %v138_v14 = vmax.f32 %v131_v10, %v137_v12 }
  0x95   :  { %v115_v13 = vadd.f32 %v114_v11, %v113_v7 }
  0x96   :  { %v142_v19 = vmax.f32 %v138_v14, %v140_v6 }
  0x97   :  { %v117_v18 = vadd.f32 %v116_v15, %v115_v13 }
  0x98   :  { %v143_v22 = vmax.f32 %v141_v17, %v142_v19 }
  0x99   :  { %v118_v21 = vadd.f32 %v117_v18, %v53_v16 }
  0x9a   :  { %v144_v23 = vmax.f32 %v120_v20, %v143_v22 }
  0x9b   :  { %119 = vst.msk [vmem:[#allocation2] sm:$0x3] %vm19_vm8, %v118_v21 }
  0x9c   :  { %145 = vst.msk [vmem:[#allocation3] sm:$0x3] %vm19_vm8, %v144_v23 }
  0xa2   :  { %v149_v25 = vld [vmem:[#allocation2] sm:$0x3] }
  0xa3   :  { %v156_v26 = vmul.f32 %v154_v24, %v149_v25  ;;  %v158_v27 = vld [vmem:[#allocation3] sm:$0x3] }
  0xa4   :  { %160 = vrot.lane.b32.xlu0 %v158_v27, %s215_s0 }
  0xa5   :  { %157 = vst.msk [vmem:[#allocation4] sm:$0x3] %vm19_vm8, %v156_v26 }
 0x116   :  { %v161_v28 = vpop.permute.xlu0 %160 }
 0x117   :  { %164 = vst.msk [vmem:[#allocation4] sm:$0x3] %vm163_vm2, %v161_v28 }
 0x118   :  { %198 = shalt.err (!%p195_p4)
}
 0x119   :  { %s199_s25 = scalar_lea.hbm %s336_s3, 32 }
 0x11a   :  { %p200_p5 = scmp.ne.s32.totalorder %s336_s3, %s199_s25  ;;  %p203_p6 = scmp.lt.u32.totalorder %s199_s25, %s336_s3 }
 0x11c   :  { %p205_p7 = pnand %p203_p6, %p200_p5 }
 0x11e   :  { %208 = shalt.err (!%p205_p7)
}
 0x11f   :  { %174 = dma.vmem_to_hbm [thread:$0]  %s172_s21, 32, %s336_s3, [#allocation5]  }
 0x120   :  { %209 = dma.done.wait [#allocation5], 32  }
 0x121   :  { %210 = vsyncadd [#allocation5], 4294967264 }
 0x122   :  { %178 = vsyncpa [#allocation5], 1 }

</bundles_post_ra>
